<compile_context>
chip_gen: v5e
topology: v5e:2x2
jax: 0.10.0
libtpu: 0.0.40
codegen_flags: <defaults>
</compile_context>

<pallas_src>
import functools

import jax
import jax.numpy as jnp
from jax.experimental import pallas as pl
from jax.experimental.pallas import tpu as pltpu


def _bilinear_matrix(out_size: int, in_size: int) -> jnp.ndarray:
    """Row-stochastic (out_size, in_size) bilinear interp matrix, align_corners=True."""
    if out_size == 1:
        w = jnp.zeros((1, in_size), jnp.float32)
        return w.at[0, 0].set(1.0)
    if in_size == 1:
        return jnp.ones((out_size, 1), jnp.float32)
    pos = jnp.arange(out_size, dtype=jnp.float32) * (in_size - 1) / (out_size - 1)
    lo = jnp.clip(jnp.floor(pos).astype(jnp.int32), 0, in_size - 1)
    hi = jnp.minimum(lo + 1, in_size - 1)
    frac = pos - lo.astype(jnp.float32)
    rows = jnp.arange(out_size)
    w = jnp.zeros((out_size, in_size), jnp.float32)
    w = w.at[rows, lo].add(1.0 - frac)
    w = w.at[rows, hi].add(frac)
    return w


def _round_up(v: int, m: int) -> int:
    return -(-v // m) * m


def _silog_kernel(x_ref, t_ref, wh_ref, wwt_ref, sum_ref, sq_ref, *,
                  block_nc: int, nc_total: int, steps_per_split: int):
    p = pl.program_id(0)          # parallel chunk (megacore axis on v7x)
    k = pl.program_id(1)          # sequential reduction axis within the chunk

    @pl.when(k == 0)
    def _():
        sum_ref[...] = jnp.zeros_like(sum_ref)
        sq_ref[...] = jnp.zeros_like(sq_ref)

    wh = wh_ref[...]              # (Ht, Hin)  bf16 (matmul dtype)
    wwt = wwt_ref[...]            # (Win, Wt)  bf16 (matmul dtype)

    # Mask the padded tail of the last block: only `nvalid` slices are real.
    start = (p * steps_per_split + k) * block_nc
    nvalid = jnp.maximum(jnp.minimum(block_nc, nc_total - start), 0)

    def body(i, carry):
        # Width upsample first: every matmul's lane dim is Wt (>= Win), and for
        # upscaling this order is never more FLOPs than height-first.
        x_i = x_ref[i].astype(wwt.dtype)                          # (Hin, Win) bf16
        tmp = jnp.dot(x_i, wwt, preferred_element_type=jnp.float32)   # (Hin, Wt) f32
        up = jnp.dot(wh, tmp.astype(wh.dtype),
                     preferred_element_type=jnp.float32)          # (Ht, Wt) f32
        tgt = t_ref[i].astype(jnp.float32)                        # (Ht, Wt) f32
        # One EUP log instead of two; like the torch module this assumes
        # positive inputs (non-positive values give NaN/Inf in the reference).
        g = jnp.log(up / tgt)
        sum_ref[...] += g
        sq_ref[...] += g * g
        return carry

    jax.lax.fori_loop(0, nvalid, body, 0)


def silog_loss(inp: jnp.ndarray, target: jnp.ndarray, *,
               max_block_nc: int | None = None,
               num_splits: int = 2,
               matmul_dtype=jnp.bfloat16) -> jnp.ndarray:
    """inp: (N, C, Hin, Win), target: (N, C, Ht, Wt). Returns scalar f32 loss.

    Matches SILogLoss.forward(input, target, mask=None, interpolate=True).
    `num_splits=2` gives one independent chunk per TensorCore on v7x megacore;
    on 1-TC chips (v5e/v6e) the extra chunk just iterates sequentially (cheap).
    """
    n, c, hin, win = inp.shape
    n2, c2, ht, wt = target.shape
    assert (n, c) == (n2, c2)
    nc = n * c

    # Tiny interpolation matrices, bf16 for the MXU.
    wh = _bilinear_matrix(ht, hin).astype(matmul_dtype)        # (Ht, Hin)
    wwt = _bilinear_matrix(wt, win).T.astype(matmul_dtype)     # (Win, Wt)

    # Native-dtype presentation of the big streams (cast happens in-kernel).
    x3 = inp.reshape(nc, hin, win)
    t3 = target.reshape(nc, ht, wt)

    # ---- generation-keyed VMEM budgeting ------------------------------------
    try:
        phys_vmem = int(pltpu.get_tpu_info().vmem_capacity_bytes)
    except Exception:
        phys_vmem = 64 * 2**20                       # v7x-sized fallback, safe everywhere
    vmem_limit = min((phys_vmem * 3) // 4, 100 * 2**20)   # ~96 MiB v5e/v6e, ~48 MiB v7x
    block_budget = max(vmem_limit - 8 * 2**20, 4 * 2**20)

    x_bytes = inp.dtype.itemsize
    t_bytes = target.dtype.itemsize
    hin_p, win_p = _round_up(hin, 16), _round_up(win, 128)
    ht_p, wt_p = _round_up(ht, 8), _round_up(wt, 128)
    per_slice = (2 * hin_p * win_p * x_bytes          # x block, double-buffered
                 + 2 * ht_p * wt_p * t_bytes)         # target block, double-buffered
    fixed = (2 * _round_up(ht, 16) * _round_up(hin, 128) * 2   # wh (double-buffered)
             + 2 * _round_up(win, 16) * wt_p * 2               # wwt (double-buffered)
             + 2 * 2 * ht_p * wt_p * 4                         # the two partial outputs
             + 8 * ht_p * wt_p * 4                             # per-iteration temporaries
             + 2 * 2**20)                                      # misc headroom
    # TODO(synk): the constant weight blocks could also use pipeline_mode=pl.Buffered(1);
    #             they are tiny now (2-D, no B-broadcast) so the gain is negligible.
    max_b = max(1, (block_budget - fixed) // per_slice)
    if max_block_nc is not None:
        max_b = min(max_b, max_block_nc)
    b = int(max(1, min(max_b, -(-nc // num_splits))))

    k_steps = -(-nc // (num_splits * b))
    nc_pad = num_splits * k_steps * b
    if nc_pad != nc:
        # Pad with ones; padded slices are masked out in-kernel anyway.
        x3 = jnp.concatenate([x3, jnp.ones((nc_pad - nc, hin, win), x3.dtype)], axis=0)
        t3 = jnp.concatenate([t3, jnp.ones((nc_pad - nc, ht, wt), t3.dtype)], axis=0)

    kernel = functools.partial(_silog_kernel, block_nc=b, nc_total=nc,
                               steps_per_split=k_steps)

    psum, psq = pl.pallas_call(
        kernel,
        out_shape=(jax.ShapeDtypeStruct((num_splits, ht, wt), jnp.float32),
                   jax.ShapeDtypeStruct((num_splits, ht, wt), jnp.float32)),
        grid_spec=pltpu.PrefetchScalarGridSpec(
            num_scalar_prefetch=0,
            grid=(num_splits, k_steps),
            in_specs=[
                pl.BlockSpec((b, hin, win), lambda p, k: (p * k_steps + k, 0, 0)),
                pl.BlockSpec((b, ht, wt), lambda p, k: (p * k_steps + k, 0, 0)),
                pl.BlockSpec((ht, hin), lambda p, k: (0, 0)),
                pl.BlockSpec((win, wt), lambda p, k: (0, 0)),
            ],
            out_specs=[
                pl.BlockSpec((None, ht, wt), lambda p, k: (p, 0, 0)),
                pl.BlockSpec((None, ht, wt), lambda p, k: (p, 0, 0)),
            ],
        ),
        compiler_params=pltpu.CompilerParams(
            dimension_semantics=("parallel", "arbitrary"),
            vmem_limit_bytes=int(vmem_limit),
        ),
    )(x3, t3, wh, wwt)

    # Scalar finalize (a few XLA ops; also what combines the per-core partials).
    n_elems = jnp.float32(nc * ht * wt)
    s = jnp.sum(psum)
    ss = jnp.sum(psq)
    mean = s / n_elems
    # torch.var default is unbiased (N-1); guard the degenerate single-element case.
    var = (ss - n_elems * mean * mean) / jnp.maximum(n_elems - 1.0, 1.0)
    return 10.0 * jnp.sqrt(var + 0.5 * mean * mean)


if __name__ == "__main__":
    def reference(inp, tgt):
        _, _, hin, win = inp.shape
        ht, wt = tgt.shape[-2:]
        wh = _bilinear_matrix(ht, hin)
        ww = _bilinear_matrix(wt, win)
        up = jnp.einsum("oh,nchw,pw->ncop", wh, inp.astype(jnp.float32), ww)
        g = jnp.log(up) - jnp.log(tgt.astype(jnp.float32))
        mean = jnp.mean(g)
        var = jnp.sum((g - mean) ** 2) / (g.size - 1)
        return 10.0 * jnp.sqrt(var + 0.5 * mean * mean)

    key = jax.random.PRNGKey(0)
    k1, k2, k3, k4 = jax.random.split(key, 4)

    # Case 1: input lower-res than target; cap B so the multi-step accumulation
    # path (k_steps > 1) is exercised.  Strictly positive values (logs are taken).
    N, C, HIN, WIN, HT, WT = 2, 4, 8, 8, 16, 16
    inp1 = jax.random.uniform(k1, (N, C, HIN, WIN), jnp.float32, 0.5, 2.0)
    tgt1 = jax.random.uniform(k2, (N, C, HT, WT), jnp.float32, 0.5, 2.0)
    loss1 = silog_loss(inp1, tgt1, max_block_nc=2)
    jax.block_until_ready(loss1)
    ref1 = reference(inp1, tgt1)
    assert jnp.allclose(loss1, ref1, rtol=2e-2, atol=2e-3), (loss1, ref1)

    # Case 2: awkward shapes (N*C not divisible by the block, odd spatial sizes)
    # to exercise padding + the in-kernel tail masking and an empty parallel chunk.
    inp2 = jax.random.uniform(k3, (1, 3, 5, 9), jnp.float32, 0.5, 2.0)
    tgt2 = jax.random.uniform(k4, (1, 3, 12, 20), jnp.float32, 0.5, 2.0)
    loss2 = silog_loss(inp2, tgt2)
    jax.block_until_ready(loss2)
    ref2 = reference(inp2, tgt2)
    assert jnp.allclose(loss2, ref2, rtol=2e-2, atol=2e-3), (loss2, ref2)

    print("KERNEL_OK")
</pallas_src>

<mosaic_0001>
module attributes {stable_mosaic.version = 11 : i64} {
  func.func @_silog_kernel(%arg0: i32, %arg1: i32, %arg2: memref<2x8x8xf32, #tpu.memory_space<vmem>>, %arg3: memref<2x16x16xf32, #tpu.memory_space<vmem>>, %arg4: memref<16x8xbf16, #tpu.memory_space<vmem>>, %arg5: memref<8x16xbf16, #tpu.memory_space<vmem>>, %arg6: memref<1x16x16xf32, #tpu.memory_space<vmem>>, %arg7: memref<1x16x16xf32, #tpu.memory_space<vmem>>) attributes {dimension_semantics = [#tpu.dimension_semantics<parallel>, #tpu.dimension_semantics<arbitrary>], iteration_bounds = array<i64: 2, 2>, scalar_prefetch = 0 : i64, scratch_operands = 0 : i64, tpu.core_type = #tpu.core_type<tc>, window_params = [{transform_indices = @transform_0, window_bounds = array<i64: 2, 8, 8>}, {transform_indices = @transform_1, window_bounds = array<i64: 2, 16, 16>}, {pipeline_mode = #tpu.pipeline_mode<synchronous>, transform_indices = @transform_2, window_bounds = array<i64: 16, 8>}, {pipeline_mode = #tpu.pipeline_mode<synchronous>, transform_indices = @transform_3, window_bounds = array<i64: 8, 16>}, {transform_indices = @transform_4, window_bounds = array<i64: 1, 16, 16>}, {transform_indices = @transform_5, window_bounds = array<i64: 1, 16, 16>}]} {
    %c0_i32 = arith.constant 0 : i32
    %0 = arith.cmpi eq, %arg1, %c0_i32 : i32
    %1 = arith.extui %0 : i1 to i32
    %c0_i32_0 = arith.constant 0 : i32
    %2 = arith.cmpi ne, %1, %c0_i32_0 : i32
    scf.if %2 {
      %cst = arith.constant 0.000000e+00 : f32
      %13 = vector.broadcast %cst : f32 to vector<16x16xf32>
      %c0_9 = arith.constant 0 : index
      %c0_10 = arith.constant 0 : index
      %c0_11 = arith.constant 0 : index
      %14 = vector.load %arg6[%c0_9, %c0_10, %c0_11] : memref<1x16x16xf32, #tpu.memory_space<vmem>>, vector<1x16x16xf32>
      %15 = vector.shape_cast %14 : vector<1x16x16xf32> to vector<16x16xf32>
      %16 = vector.shape_cast %13 : vector<16x16xf32> to vector<1x16x16xf32>
      tpu.vector_store %arg6[%c0_9, %c0_10, %c0_11], %16 {strides = array<i32>} : memref<1x16x16xf32, #tpu.memory_space<vmem>>, vector<1x16x16xf32>,
      %cst_12 = arith.constant 0.000000e+00 : f32
      %17 = vector.broadcast %cst_12 : f32 to vector<16x16xf32>
      %c0_13 = arith.constant 0 : index
      %c0_14 = arith.constant 0 : index
      %c0_15 = arith.constant 0 : index
      %18 = vector.load %arg7[%c0_13, %c0_14, %c0_15] : memref<1x16x16xf32, #tpu.memory_space<vmem>>, vector<1x16x16xf32>
      %19 = vector.shape_cast %18 : vector<1x16x16xf32> to vector<16x16xf32>
      %20 = vector.shape_cast %17 : vector<16x16xf32> to vector<1x16x16xf32>
      tpu.vector_store %arg7[%c0_13, %c0_14, %c0_15], %20 {strides = array<i32>} : memref<1x16x16xf32, #tpu.memory_space<vmem>>, vector<1x16x16xf32>,
    } else {
    }
    %c0 = arith.constant 0 : index
    %c0_1 = arith.constant 0 : index
    %3 = vector.load %arg4[%c0, %c0_1] : memref<16x8xbf16, #tpu.memory_space<vmem>>, vector<16x8xbf16>
    %c0_2 = arith.constant 0 : index
    %c0_3 = arith.constant 0 : index
    %4 = vector.load %arg5[%c0_2, %c0_3] : memref<8x16xbf16, #tpu.memory_space<vmem>>, vector<8x16xbf16>
    %c2_i32 = arith.constant 2 : i32
    %5 = arith.muli %arg0, %c2_i32 : i32
    %6 = arith.addi %5, %arg1 : i32
    %c2_i32_4 = arith.constant 2 : i32
    %7 = arith.muli %6, %c2_i32_4 : i32
    %c8_i32 = arith.constant 8 : i32
    %8 = arith.subi %c8_i32, %7 : i32
    %c2_i32_5 = arith.constant 2 : i32
    %9 = arith.minsi %c2_i32_5, %8 : i32
    %c0_i32_6 = arith.constant 0 : i32
    %10 = arith.maxsi %9, %c0_i32_6 : i32
    %c0_i32_7 = arith.constant 0 : i32
    %c0_i32_8 = arith.constant 0 : i32
    %11 = arith.subi %10, %c0_i32_8 : i32
    %12 = arith.addi %c0_i32_8, %11 : i32
    %c1_i32 = arith.constant 1 : i32
    scf.for %arg8 = %c0_i32_8 to %12 step %c1_i32  : i32 {
      %13 = arith.index_cast %arg8 : i32 to index
      %c0_9 = arith.constant 0 : index
      %c0_10 = arith.constant 0 : index
      %14 = vector.load %arg2[%13, %c0_9, %c0_10] : memref<2x8x8xf32, #tpu.memory_space<vmem>>, vector<1x8x8xf32>
      %15 = vector.shape_cast %14 : vector<1x8x8xf32> to vector<8x8xf32>
      %16 = arith.truncf %15 : vector<8x8xf32> to vector<8x8xbf16>
      %cst = arith.constant dense<0.000000e+00> : vector<8x16xf32>
      %17 = tpu.matmul %16, %4, %cst {dimension_numbers = #tpu.dot_dimension_numbers<[1], [0], [0], [1], [0, 0, 1, 1], [], []>} : vector<8x8xbf16>, vector<8x16xbf16>, vector<8x16xf32> -> vector<8x16xf32>
      %18 = arith.truncf %17 : vector<8x16xf32> to vector<8x16xbf16>
      %cst_11 = arith.constant dense<0.000000e+00> : vector<16x16xf32>
      %19 = tpu.matmul %3, %18, %cst_11 {dimension_numbers = #tpu.dot_dimension_numbers<[1], [0], [0], [1], [0, 0, 1, 1], [], []>} : vector<16x8xbf16>, vector<8x16xbf16>, vector<16x16xf32> -> vector<16x16xf32>
      %20 = arith.index_cast %arg8 : i32 to index
      %c0_12 = arith.constant 0 : index
      %c0_13 = arith.constant 0 : index
      %21 = vector.load %arg3[%20, %c0_12, %c0_13] : memref<2x16x16xf32, #tpu.memory_space<vmem>>, vector<1x16x16xf32>
      %22 = vector.shape_cast %21 : vector<1x16x16xf32> to vector<16x16xf32>
      %23 = arith.divf %19, %22 : vector<16x16xf32>
      %24 = math.log %23 : vector<16x16xf32>
      %c0_14 = arith.constant 0 : index
      %c0_15 = arith.constant 0 : index
      %c0_16 = arith.constant 0 : index
      %25 = vector.load %arg6[%c0_14, %c0_15, %c0_16] : memref<1x16x16xf32, #tpu.memory_space<vmem>>, vector<1x16x16xf32>
      %26 = vector.shape_cast %25 : vector<1x16x16xf32> to vector<16x16xf32>
      %27 = arith.addf %26, %24 : vector<16x16xf32>
      %c0_17 = arith.constant 0 : index
      %c0_18 = arith.constant 0 : index
      %c0_19 = arith.constant 0 : index
      %28 = vector.load %arg6[%c0_17, %c0_18, %c0_19] : memref<1x16x16xf32, #tpu.memory_space<vmem>>, vector<1x16x16xf32>
      %29 = vector.shape_cast %28 : vector<1x16x16xf32> to vector<16x16xf32>
      %30 = vector.shape_cast %27 : vector<16x16xf32> to vector<1x16x16xf32>
      tpu.vector_store %arg6[%c0_17, %c0_18, %c0_19], %30 {strides = array<i32>} : memref<1x16x16xf32, #tpu.memory_space<vmem>>, vector<1x16x16xf32>,
      %c0_20 = arith.constant 0 : index
      %c0_21 = arith.constant 0 : index
      %c0_22 = arith.constant 0 : index
      %31 = vector.load %arg7[%c0_20, %c0_21, %c0_22] : memref<1x16x16xf32, #tpu.memory_space<vmem>>, vector<1x16x16xf32>
      %32 = vector.shape_cast %31 : vector<1x16x16xf32> to vector<16x16xf32>
      %33 = arith.mulf %24, %24 : vector<16x16xf32>
      %34 = arith.addf %32, %33 : vector<16x16xf32>
      %c0_23 = arith.constant 0 : index
      %c0_24 = arith.constant 0 : index
      %c0_25 = arith.constant 0 : index
      %35 = vector.load %arg7[%c0_23, %c0_24, %c0_25] : memref<1x16x16xf32, #tpu.memory_space<vmem>>, vector<1x16x16xf32>
      %36 = vector.shape_cast %35 : vector<1x16x16xf32> to vector<16x16xf32>
      %37 = vector.shape_cast %34 : vector<16x16xf32> to vector<1x16x16xf32>
      tpu.vector_store %arg7[%c0_23, %c0_24, %c0_25], %37 {strides = array<i32>} : memref<1x16x16xf32, #tpu.memory_space<vmem>>, vector<1x16x16xf32>,
    }
    return
  }
  func.func @transform_0(%arg0: i32, %arg1: i32) -> (i32, i32, i32) {
    %c2_i32 = arith.constant 2 : i32
    %0 = arith.muli %arg0, %c2_i32 : i32
    %1 = arith.addi %0, %arg1 : i32
    %c0_i32 = arith.constant 0 : i32
    %c0_i32_0 = arith.constant 0 : i32
    %c0_i32_1 = arith.constant 0 : i32
    return %1, %c0_i32, %c0_i32_0 : i32, i32, i32
  }
  func.func @transform_1(%arg0: i32, %arg1: i32) -> (i32, i32, i32) {
    %c2_i32 = arith.constant 2 : i32
    %0 = arith.muli %arg0, %c2_i32 : i32
    %1 = arith.addi %0, %arg1 : i32
    %c0_i32 = arith.constant 0 : i32
    %c0_i32_0 = arith.constant 0 : i32
    %c0_i32_1 = arith.constant 0 : i32
    return %1, %c0_i32, %c0_i32_0 : i32, i32, i32
  }
  func.func @transform_2(%arg0: i32, %arg1: i32) -> (i32, i32) {
    %c0_i32 = arith.constant 0 : i32
    %c0_i32_0 = arith.constant 0 : i32
    %c0_i32_1 = arith.constant 0 : i32
    return %c0_i32, %c0_i32_0 : i32, i32
  }
  func.func @transform_3(%arg0: i32, %arg1: i32) -> (i32, i32) {
    %c0_i32 = arith.constant 0 : i32
    %c0_i32_0 = arith.constant 0 : i32
    %c0_i32_1 = arith.constant 0 : i32
    return %c0_i32, %c0_i32_0 : i32, i32
  }
  func.func @transform_4(%arg0: i32, %arg1: i32) -> (i32, i32, i32) {
    %c0_i32 = arith.constant 0 : i32
    %c0_i32_0 = arith.constant 0 : i32
    %c0_i32_1 = arith.constant 0 : i32
    return %arg0, %c0_i32, %c0_i32_0 : i32, i32, i32
  }
  func.func @transform_5(%arg0: i32, %arg1: i32) -> (i32, i32, i32) {
    %c0_i32 = arith.constant 0 : i32
    %c0_i32_0 = arith.constant 0 : i32
    %c0_i32_1 = arith.constant 0 : i32
    return %arg0, %c0_i32, %c0_i32_0 : i32, i32, i32
  }
}

</mosaic_0001>

<bundles_post_ra>
// kernel: tpu_custom_call.1
= control target key start
LH: loop header
LB: loop body
LE: loop exit
PB: predicated region body
PF: predicated region fallthrough
CT: control target
= control target key end

     0   :  { %s1377_s0 = inlined_call_operand.hbm [shape: f32[8,8,8], index: 0, kind: input, shape index: {}]   ;;  %s1378_s1 = inlined_call_operand.hbm [shape: f32[8,16,16], index: 1, kind: input, shape index: {}]   ;;  %s1379_s2 = inlined_call_operand.vmem [shape: bf16[16,8], index: 2, kind: input, shape index: {}]   ;;  %s1380_s3 = inlined_call_operand.vmem [shape: bf16[8,16], index: 3, kind: input, shape index: {}]   ;;  %s1381_s4 = inlined_call_operand.hbm [shape: f32[2,16,16], index: 4, kind: output, shape index: {0}]   ;;  %s1382_s5 = inlined_call_operand.hbm [shape: f32[2,16,16], index: 5, kind: output, shape index: {1}]  }
   0x1   :  { %1390 = sst [smem:[#allocation23_spill]] %s1377_s0 }
   0x2   :  { %11 = vsyncpa [#allocation3], 0 }
   0x3   :  { %13 = vsyncpa [#allocation3 + $0x1], 0 }
   0x4   :  { %14 = vsyncpa [#allocation6], 0 }
   0x5   :  { %16 = vsyncpa [#allocation6 + $0x1], 0 }
   0x6   :  { %17 = vsyncpa [#allocation4], 0 }
   0x7   :  { %19 = vsyncpa [#allocation4 + $0x1], 0 }
   0x8   :  { %20 = vsyncpa [#allocation9], 0 }
   0x9   :  { %22 = vsyncpa [#allocation9 + $0x1], 0  ;;  %s1102_s18 = smov 0   ;;  %s1104_s19 = smov 0  }
   0xa   :  { %s1106_s20 = smov 0   ;;  %s1108_s21 = smov 0  }
   0xb   :  { %s1110_s22 = smov 0   ;;  %s1112_s23 = smov 0  }
   0xc   :  { %s1114_s24 = smov 0   ;;  %s1116_s25 = smov 0  }
   0xd   :  { %s1118_s26 = smov 0   ;;  %s1120_s27 = smov 0  }
   0xe   :  { %s1122_s28 = smov 0  }
   0xf LB: > { %1391 = sst [smem:[#allocation14_spill]] %s1029_s20  ;;  %s651_s29 = sadd.s32 4294967295, %s1061_s28   ;;  %s1061_s28 = sphi %s1122_s28, %s28_s28   ;;  %s1057_s27 = sphi %s1120_s27, %s1415_s27   ;;  %s1053_s26 = sphi %s1118_s26, %s1414_s26   ;;  %s1049_s25 = sphi %s1116_s25, %s1413_s25   ;;  %s1045_s24 = sphi %s1114_s24, %s1412_s24   ;;  %s1041_s23 = sphi %s1112_s23, %s1411_s23   ;;  %s1037_s22 = sphi %s1110_s22, %s1419_s22   ;;  %s1033_s21 = sphi %s1108_s21, %s1418_s21   ;;  %s1029_s20 = sphi %s1106_s20, %s1409_s20   ;;  %s1025_s19 = sphi %s1104_s19, %s1417_s19   ;;  %s1021_s18 = sphi %s1102_s18, %s1416_s18  }
  0x10   : > { %1392 = sst [smem:[#allocation15_spill]] %s1041_s23  ;;  %s37_s6 = sadd.s32 1, %s1053_s26 }
  0x11   : > { %1393 = sst [smem:[#allocation16_spill]] %s1053_s26  ;;  %s40_s7 = sadd.s32 1, %s1057_s27 }
  0x12   : > { %1394 = sst [smem:[#allocation17_spill]] %s1057_s27  ;;  %p38_p0 = scmp.ge.s32.totalorder %s37_s6, 2 }
  0x13   : > { %s653_s8 = sshll.u32 %s1057_s27, 1  ;;  %s51_s10 = sadd.s32 1, %s1041_s23 }
  0x14   : > { %s1161_s9 = sadd.s32 %s1053_s26, %s653_s8  ;;  %s1421_s6 = smov (%p38_p0, %s37_s6), 0 }
  0x15   : > { %1395 = sst [smem:[#allocation18_spill]] %s1421_s6  ;;  %s1423_s7 = smov (!%p38_p0, %s40_s7), %s1057_s27 }
  0x16   : > { %p58_p1 = scmp.ne.s32.totalorder %s1041_s23, %s1037_s22  ;;  %p59_p2 = scmp.eq.s32.totalorder %s1061_s28, 0 }
  0x17   : > { %p42_p3 = scmp.ge.s32.totalorder %s1423_s7, 2  ;;  %p64_p4 = scmp.ne.s32.totalorder %s1037_s22, %s1033_s21 }
  0x18   : > { %p1171_p5 = por %p59_p2, %p58_p1  ;;  %p65_p6 = scmp.eq.s32.totalorder %s651_s29, 0 }
  0x19   : > { %s1425_s7 = smov (%p42_p3, %s1423_s7), 0  ;;  %s149_s13 = sadd.s32 1, %s1029_s20 }
  0x1a   : > { %1397 = sst [smem:[#allocation19_spill]] %s1425_s7  ;;  %p1177_p7 = por %p65_p6, %p64_p4 }
  0x1b   : > { %s654_s14 = sshll.u32 %s1425_s7, 1  ;;  %s146_s15 = ssub.s32 %s1057_s27, %s1425_s7 }
  0x1c   : > { %s47_s16 = sadd.s32 %s654_s14, %s1421_s6  ;;  %p147_p8 = scmp.eq.s32.totalorder %s146_s15, 0 }
  0x1d   : > { %s48_s17 = ssub.s32 %s1161_s9, %s47_s16  ;;  %p159_p9 = scmp.ne.s32.totalorder %s1029_s20, %s1025_s19 }
  0x1e   : > { %p49_p10 = scmp.eq.s32.totalorder %s48_s17, 0  ;;  %p160_p11 = scmp.eq.s32.totalorder %s651_s29, 3 }
  0x1f   : > { %s1190_s21 = scalar_select %p147_p8, %s1029_s20, %s149_s13  }
  0x20   : > { %s1193_s8 = scalar_select %p49_p10, %s1041_s23, %s51_s10  }
  0x21   : > { %1399 = sst [smem:[#allocation20_spill]] %s1190_s21  ;;  %p1195_p12 = por %p160_p11, %p159_p9 }
  0x22   : > { %1400 = sst [smem:[#allocation21_spill]] %s1193_s8  ;;  %p165_p13 = scmp.ne.s32.totalorder %s1025_s19, %s1021_s18 }
  0x23   : > { %s1402_s7 = sadd.s32 4294967294, %s1061_s28   ;;  %p728_p1 = scmp.lt.s32.totalorder %s1061_s28, 4 }
  0x24   : > { %p166_p0 = scmp.eq.s32.totalorder %s1402_s7, 3  ;;  %s1205_s14 = sand.u32 1, %s1041_s23  }
  0x25   : > { %s659_s10 = sshll.u32 %s1205_s14, 4  ;;  %s698_s13 = sshll.u32 %s1161_s9, 4 }
  0x26   : > { %p1207_p2 = por %p166_p0, %p165_p13  ;;  %s1405_s0 = sld [smem:[#allocation23_spill]] }
  0x27   : > { %s222_s27 = scalar_lea.vmem [#allocation2], %s659_s10  ;;  %p1218_p3 = pnand %p728_p1, %p1171_p5 }
  0x28   : > { %s1403_s29 = scalar_select %p1207_p2, 1, 0 }
  0x29   : > { %s232_s7 = sshll.u32 %s222_s27, 4  ;;  %p668_p4 = scmp.ge.s32.totalorder %s1061_s28, 1  ;;  %s233_s7 = int_to_ptr.vmem [resolvable:$true] %s232_s7 }
  0x2a   : > { %1404 = sst [smem:[#allocation22_spill]] %s1403_s29  ;;  %p265_p6 = scmp.lt.s32.totalorder %s1061_s28, 5 }
  0x2b   : > { %s219_s8 = scalar_lea.sflag [#allocation3], %s1205_s14  ;;  %s1067_s23 = smov 128  }
  0x2c   : > { %s229_s17 = scalar_lea.hbm %s1405_s0, %s698_s13  ;;  %s1068_s15 = smov 8  }
  0x2d   : > { %s230_s6 = sshll.u32 %s229_s17, 4  ;;  %p266_p8 = pnand %p668_p4, %p265_p6  ;;  %s231_s6 = int_to_ptr.hbm [resolvable:$true] %s230_s6 }
  0x2e   : > { %717 = dma.hbm_to_vmem [thread:$0]  (!%p1218_p3), %s231_s6, 256, %s233_s7, %s219_s8, %s1067_s23, %s1067_s23, %s1068_s15  }
  0x2f   : > { %s663_s10 = sshll.u32 %s1205_s14, 5  ;;  %s700_s27 = sshll.u32 %s1161_s9, 5 }
  0x30   : > { %s254_s11 = scalar_lea.hbm %s1378_s1, %s700_s27  ;;  %s246_s0 = scalar_lea.vmem [#allocation5], %s663_s10 }
  0x31   : > { %s255_s17 = sshll.u32 %s254_s11, 4  ;;  %s257_s21 = sshll.u32 %s246_s0, 4  ;;  %s256_s17 = int_to_ptr.hbm [resolvable:$true] %s255_s17  ;;  %s258_s21 = int_to_ptr.vmem [resolvable:$true] %s257_s21 }
  0x32   : > { %s243_s20 = scalar_lea.sflag [#allocation6], %s1205_s14  ;;  %269 = sbr.rel (%p266_p8) target bundleno = 404 (0x194), region = 36 }
  0x33   : > { %720 = dma.hbm_to_vmem [thread:$0]  (!%p1218_p3), %s256_s17, 512, %s258_s21, %s243_s20, %s1067_s23, %s1067_s23, %s1068_s15  }
  0x34   : > { %s271_s29 = sand.u32 (!%p266_p8), 1, %s1037_s22  }
  0x35   : > { %s669_s6 = sshll.u32 (!%p266_p8), %s271_s29, 4  ;;  %s272_s8 = scalar_lea.sflag (!%p266_p8), [#allocation3], %s271_s29 }
  0x36   : > { %s1236_s7 = scalar_lea.vmem (!%p266_p8), [#allocation2], %s669_s6 }
  0x37   : > { %1004 = dma.done.wait (%p1177_p7), %s272_s8, 256  }
  0x38   : > { %1006 = vsyncadd (%p1177_p7), %s272_s8, 4294967040  ;;  %s670_s0 = sshll.u32 %s271_s29, 5  ;;  %s282_s9 = scalar_lea.sflag [#allocation6], %s271_s29 }
  0x39   : > { %s1242_s10 = scalar_lea.vmem [#allocation5], %s670_s0 }
  0x3a   : > { %1008 = dma.done.wait (%p1177_p7), %s282_s9, 512  }
  0x3b   : > { %1010 = vsyncadd (%p1177_p7), %s282_s9, 4294966784  ;;  %s1249_s20 = sand.u32 1, %s1025_s19   ;;  %p673_p5 = scmp.ne.s32.totalorder %s1045_s24, 0 }
  0x3c   : > { %s671_s23 = sshll.u32 %s1249_s20, 4 }
  0x3d   : > { %s1252_s26 = scalar_lea.vmem [#allocation7], %s671_s23  ;;  %s1254_s21 = scalar_lea.vmem [#allocation8], %s671_s23 }
  0x3e   : > { %333 = sbr.rel (%p673_p5) target bundleno = 72 (0x48), region = 48 }
  0x43   : > { %vm334_vm0 = vcmask 130048   ;;  %v1069_v0 = vmov 0.0  }
  0x44   : > { %335 = vst.msk [vmem:[%s1252_s26] sm:$0xff] %vm334_vm0, %v1069_v0 }
  0x45   : > { %336 = vst.msk [vmem:[%s1252_s26 + $0x8] sm:$0xff] %vm334_vm0, %v1069_v0 }
  0x46   : > { %337 = vst.msk [vmem:[%s1254_s21] sm:$0xff] %vm334_vm0, %v1069_v0 }
  0x47   : > { %338 = vst.msk [vmem:[%s1254_s21 + $0x8] sm:$0xff] %vm334_vm0, %v1069_v0 }
  0x48 PF: > { %v1264_v1 = vld [vmem:[%s1379_s2] sm:$0xf]  ;;  %v1269_v2 = vld [vmem:[%s1379_s2] sm:$0xf0]  ;;  %s674_s16 = sshll.u32 %s1049_s25, 1 }
  0x49   : > { %v1274_v3 = vld [vmem:[%s1380_s3] sm:$0xf]  ;;  %s343_s11 = sadd.s32 %s1045_s24, %s674_s16 }
  0x4a   : > { %s675_s17 = sshll.u32 %s343_s11, 1 }
  0x4b   : > { %s345_s6 = ssub.s32 8, %s675_s17 }
  0x4c   : > { %p346_p7 = scmp.lt.s32.totalorder %s345_s6, 2  ;;  %p676_p9 = scmp.gt.s32.totalorder %s345_s6, 0 }
  0x4e   : > { %s1427_s6 = smov (!%p346_p7, %s345_s6), 2 }
  0x4f   : > { %s1429_s6 = smov (!%p676_p9, %s1427_s6), 0 }
  0x50   : > { %p681_p10 = scmp.le.s32.totalorder %s1429_s6, 0 }
  0x51   : > { %s1281_s8 = smov (!%p681_p10), 0  }
  0x52   : > { %595 = sbr.rel (%p681_p10) target bundleno = 374 (0x176), region = 118 }
  0x57 LB: >> { %vm364_vm1 = vcmask 1043456   ;;  %s682_s24 = sshll.u32 %s1065_s8, 3  ;;  %vm360_vm2 = vcmask 64512   ;;  %v687_v10 = vor.u32 %v1269_v2, %v1264_v1  ;;  %s689_s9 = sshll.u32 %s1065_s8, 4  ;;  %v445_v38 = vld [vmem:[%s1252_s26] sm:$0xff]  ;;  %vm449_vm11 = vcmask 130048   ;;  %s1065_s8 = sphi %s1281_s8, %s353_s8  }
  0x58   : >> { %v366_v4 = vsel %vm364_vm1, %v1274_v3, 0  ;;  %s357_s0 = scalar_lea.vmem %s1236_s7, %s682_s24 [#allocation2]  ;;  %s408_s23 = scalar_lea.vmem %s1242_s10, %s689_s9 [#allocation5]  ;;  %v452_v41 = vld [vmem:[%s1254_s21] sm:$0xff]  ;;  %v446_v46 = vld [vmem:[%s1252_s26 + $0x8] sm:$0xff] }
  0x59   : >> { %375 = vmatpush.bf16.msra.mxu0 %v366_v4  ;;  %v358_v5 = vld [vmem:[%s357_s0] sm:$0xff]  ;;  %v410_v13 = vld [vmem:[%s408_s23 + $0x8] sm:$0xff]  ;;  %s353_s8 = sadd.s32 1, %s1065_s8  }
  0x5a   : >> { %v359_v6 = vpack.c.bf16 %v358_v5, %v358_v5  ;;  %v409_v12 = vld [vmem:[%s408_s23] sm:$0xff]  ;;  %vm431_vm7 = vweird.f32 %v410_v13  ;;  %v437_v28 = vand.u32 2147483648, %v410_v13  ;;  %v435_v30 = vand.u32 2147483647, %v410_v13  ;;  %v453_v48 = vld [vmem:[%s1254_s21 + $0x8] sm:$0xff]  ;;  %p352_p11 = scmp.ge.s32.totalorder %s353_s8, %s1429_s6 }
  0x5b   : >> { %831 = vrcp.f32 %v409_v12  ;;  %vm416_vm3 = vweird.f32 %v409_v12  ;;  %v422_v20 = vand.u32 2147483648, %v409_v12  ;;  %v420_v22 = vand.u32 2147483647, %v409_v12 }
  0x5c   : >> { %683 = vmatmul.msk.bf16.vlgmr.msra.gmra.mxu0 %vm360_vm2, %v359_v6  ;;  %833 = vrcp.f32 %v410_v13  ;;  %v438_v33 = vor.u32 1.1754944e-38, %v437_v28  ;;  %vm436_vm10 = vcmp.eq.f32.partialorder %v435_v30, 8.507059e+37 }
  0x5d   : >> { %v423_v24 = vor.u32 1.1754944e-38, %v422_v20  ;;  %vm421_vm6 = vcmp.eq.f32.partialorder %v420_v22, 8.507059e+37 }
  0x61   : >> { %v832_v14 = vpop.eup %831 }
  0x62   : >> { %v412_v15 = vmul.f32 %v832_v14, %v409_v12  ;;  %v834_v17 = vpop.eup %833  ;;  %vm417_vm4 = vweird.f32 %v832_v14 }
  0x63   : >> { %v427_v19 = vmul.f32 %v834_v17, %v410_v13  ;;  %vm418_vm5 = vmor %vm416_vm3, %vm417_vm4  ;;  %vm432_vm8 = vweird.f32 %v834_v17 }
  0x64   : >> { %v413_v16 = vsub.f32 1.0, %v412_v15  ;;  %vm433_vm9 = vmor %vm431_vm7, %vm432_vm8 }
  0x65   : >> { %v428_v23 = vsub.f32 1.0, %v427_v19 }
  0x66   : >> { %v414_v18 = vmul.f32 %v832_v14, %v413_v16 }
  0x67   : >> { %v429_v26 = vmul.f32 %v834_v17, %v428_v23 }
  0x68   : >> { %v415_v21 = vadd.f32 %v832_v14, %v414_v18 }
  0x69   : >> { %v430_v29 = vadd.f32 %v834_v17, %v429_v26 }
  0x6a   : >> { %v419_v25 = vsel %vm418_vm5, %v832_v14, %v415_v21 }
  0x6b   : >> { %v424_v27 = vsel %vm421_vm6, %v423_v24, %v419_v25  ;;  %v434_v34 = vsel %vm433_vm9, %v834_v17, %v430_v29 }
  0x6c   : >> { %v439_v35 = vsel %vm436_vm10, %v438_v33, %v434_v34 }
  0xd9   : >> { %v377_v7 = vpop.f32.mrf.mxu0 }
  0xda   : >> { %v381_v8 = vpack.c.bf16 %v377_v7, %v377_v7 }
  0xdc   : >> { %v391_v9 = vsel %vm364_vm1, %v381_v8, 0 }
  0xdd   : >> { %400 = vmatpush.bf16.msra.mxu1 %v391_v9 }
  0xe0   : >> { %688 = vmatmul.msk.bf16.vlgmr.msra.gmra.mxu1 %vm360_vm2, %v687_v10 }
  0xe1   : >> { %v379_v11 = vpop.f32.mrf.mxu0 }
 0x15d   : >> { %v402_v31 = vpop.f32.mrf.mxu1 }
 0x15e   : >> { %v425_v32 = vmul.f32 %v424_v27, %v402_v31 }
 0x160   : >> { %835 = vlog2.f32 %v425_v32 }
 0x165   : >> { %v404_v36 = vpop.f32.mrf.mxu1 }
 0x166   : >> { %v836_v37 = vpop.eup %835  ;;  %v440_v39 = vmul.f32 %v439_v35, %v404_v36 }
 0x167   : >> { %v442_v40 = vmul.f32 0.6931472, %v836_v37 }
 0x168   : >> { %837 = vlog2.f32 %v440_v39 }
 0x169   : >> { %v447_v42 = vadd.f32 %v445_v38, %v442_v40  ;;  %v454_v43 = vmul.f32 %v442_v40, %v442_v40 }
 0x16b   : >> { %450 = vst.msk [vmem:[%s1252_s26] sm:$0xff] %vm449_vm11, %v447_v42  ;;  %v456_v44 = vadd.f32 %v454_v43, %v452_v41 }
 0x16d   : >> { %458 = vst.msk [vmem:[%s1254_s21] sm:$0xff] %vm449_vm11, %v456_v44 }
 0x16e   : >> { %v838_v45 = vpop.eup %837 }
 0x16f   : >> { %v444_v47 = vmul.f32 0.6931472, %v838_v45 }
 0x171   : >> { %v448_v49 = vadd.f32 %v446_v46, %v444_v47  ;;  %v455_v50 = vmul.f32 %v444_v47, %v444_v47  ;;  %355 = sbr.rel (!%p352_p11) target bundleno = 87 (0x57), region = 124 }
 0x173   : >> { %451 = vst.msk [vmem:[%s1252_s26 + $0x8] sm:$0xff] %vm449_vm11, %v448_v49  ;;  %v457_v51 = vadd.f32 %v455_v50, %v453_v48 }
 0x175   : >> { %459 = vst.msk [vmem:[%s1254_s21 + $0x8] sm:$0xff] %vm449_vm11, %v457_v51 }
 0x176 PF: > { %s704_s12 = sshll.u32 %s1049_s25, 4  ;;  %s478_s27 = sshll.u32 %s1252_s26, 4  ;;  %s479_s27 = int_to_ptr.vmem [resolvable:$true] %s478_s27 }
 0x177   : > { %s477_s15 = scalar_lea.hbm %s1381_s4, %s704_s12  ;;  %s461_s16 = scalar_lea.sflag [#allocation4], %s1249_s20 }
 0x178   : > { %s480_s13 = sshll.u32 %s477_s15, 4  ;;  %s919_s25 = scalar_lea.hbm %s1381_s4, 32  ;;  %s481_s13 = int_to_ptr.hbm [resolvable:$true] %s480_s13 }
 0x179   : > { %s913_s11 = sshra.s32 %s481_s13, 4  ;;  %s914_s11 = int_to_ptr.hbm [resolvable:$true] %s913_s11 }
 0x17a   : > { %s915_s17 = scalar_lea.hbm %s914_s11, 16  ;;  %p920_p3 = scmp.lt.s32.totalorder %s914_s11, %s1381_s4 }
 0x17b   : > { %p916_p13 = scmp.ne.s32.totalorder %s914_s11, %s915_s17  ;;  %p921_p4 = scmp.lt.s32.totalorder %s919_s25, %s915_s17 }
 0x17d   : > { %p917_p0 = pnand %p916_p13, %p1195_p12  ;;  %p922_p6 = por %p921_p4, %p920_p3 }
 0x17f   : > { %p918_p1 = pneg %p917_p0 }
 0x181   : > { %p923_p8 = pnand %p922_p6, %p918_p1 }
 0x183   : > { %926 = shalt.err (!%p923_p8)
}
 0x184   : > { %s1070_s26 = smov 128   ;;  %s1071_s24 = smov 8  }
 0x185   : > { %710 = dma.vmem_to_hbm [thread:$0]  (%p1195_p12), %s479_s27, 256, %s481_s13, %s461_s16, %s1070_s26, %s1070_s26, %s1071_s24  }
 0x186   : > { %s494_s23 = scalar_lea.hbm %s1382_s5, %s704_s12  ;;  %s495_s14 = sshll.u32 %s1254_s21, 4  ;;  %s496_s14 = int_to_ptr.vmem [resolvable:$true] %s495_s14 }
 0x187   : > { %s497_s29 = sshll.u32 %s494_s23, 4  ;;  %s466_s15 = scalar_lea.sflag [#allocation9], %s1249_s20  ;;  %s498_s29 = int_to_ptr.hbm [resolvable:$true] %s497_s29 }
 0x188   : > { %s941_s11 = sshra.s32 %s498_s29, 4  ;;  %s947_s27 = scalar_lea.hbm %s1382_s5, 32  ;;  %s942_s11 = int_to_ptr.hbm [resolvable:$true] %s941_s11 }
 0x189   : > { %s943_s17 = scalar_lea.hbm %s942_s11, 16  ;;  %p948_p10 = scmp.lt.s32.totalorder %s942_s11, %s1382_s5 }
 0x18a   : > { %p944_p5 = scmp.ne.s32.totalorder %s942_s11, %s943_s17  ;;  %p949_p11 = scmp.lt.s32.totalorder %s947_s27, %s943_s17 }
 0x18c   : > { %p945_p7 = pnand %p944_p5, %p1195_p12  ;;  %p950_p13 = por %p949_p11, %p948_p10 }
 0x18e   : > { %p946_p9 = pneg %p945_p7 }
 0x190   : > { %p951_p0 = pnand %p950_p13, %p946_p9 }
 0x192   : > { %954 = shalt.err (!%p951_p0)
}
 0x193   : > { %711 = dma.vmem_to_hbm [thread:$0]  (%p1195_p12), %s496_s14, 256, %s498_s29, %s466_s15, %s1070_s26, %s1070_s26, %s1071_s24  }
 0x194 PF: > { %p729_p1 = scmp.ge.s32.totalorder %s1061_s28, 2  ;;  %s512_s21 = sand.u32 1, %s1021_s18  }
 0x195   : > { %s513_s12 = scalar_lea.sflag [#allocation4], %s512_s21 }
 0x196   : > { %p722_p3 = pnand %p729_p1, %p1207_p2 }
 0x198   : > { %p723_p4 = pneg %p722_p3 }
 0x19a   : > { %1012 = dma.done.wait (%p723_p4), %s513_s12, 256  }
 0x19b   : > { %1014 = vsyncadd (%p723_p4), %s513_s12, 4294967040  ;;  %s523_s25 = scalar_lea.sflag [#allocation9], %s512_s21 }
 0x19c   : > { %1016 = dma.done.wait (%p723_p4), %s523_s25, 256  }
 0x19d   : > { %1018 = vsyncadd (%p723_p4), %s523_s25, 4294967040  ;;  %s28_s28 = sadd.s32 1, %s1061_s28   ;;  %s1408_s30 = sld [smem:[#allocation14_spill]] }
 0x19e   : > { %p25_p6 = scmp.ge.s32.totalorder %s28_s28, 6   ;;  %s1409_s20 = sld [smem:[#allocation20_spill]] }
 0x19f   : > { %s1410_s6 = sld [smem:[#allocation15_spill]]  ;;  %s1416_s18 = smov %s1025_s19 }
 0x1a0   : > { %s1411_s23 = sld [smem:[#allocation21_spill]]  ;;  %s1418_s21 = smov %s1037_s22 }
 0x1a1   : > { %s1412_s24 = sld [smem:[#allocation16_spill]]  ;;  %27 = sbr.rel (!%p25_p6) target bundleno = 15 (0xf), region = 135 }
 0x1a2   : > { %s1413_s25 = sld [smem:[#allocation17_spill]] }
 0x1a3   : > { %s1414_s26 = sld [smem:[#allocation18_spill]]  ;;  %s1417_s19 = smov %s1408_s30 }
 0x1a4   : > { %s1415_s27 = sld [smem:[#allocation19_spill]] }
 0x1a5   : > { %s1419_s22 = smov %s1410_s6 }
 0x1a6   :  { %529 = vsyncpa [#allocation3], 1 }
 0x1a7   :  { %531 = vsyncpa [#allocation3 + $0x1], 1 }
 0x1a8   :  { %532 = vsyncpa [#allocation6], 1 }
 0x1a9   :  { %534 = vsyncpa [#allocation6 + $0x1], 1 }
 0x1aa   :  { %535 = vsyncpa [#allocation4], 1 }
 0x1ab   :  { %537 = vsyncpa [#allocation4 + $0x1], 1 }
 0x1ac   :  { %538 = vsyncpa [#allocation9], 1 }
 0x1ad   :  { %540 = vsyncpa [#allocation9 + $0x1], 1 }

</bundles_post_ra>
